<compile_context>
chip_gen: v7x
topology: tpu7x:2x2x1
jax: 0.10.0
libtpu: 0.0.40
codegen_flags: <defaults>
</compile_context>

<pallas_src>
import jax
import jax.numpy as jnp
from jax.experimental import pallas as pl
from jax.experimental.pallas import tpu as pltpu

LANE = 128  # TPU lane width; feature dims are padded to multiples of this.


def _round_up(x, m):
    return ((x + m - 1) // m) * m


def mlp_actor_kernel(obs_ref, w1_ref, b1_ref, w2_ref, b2_ref, w3_ref, b3_ref,
                     mask_ref, out_ref):
    x = obs_ref[...]                                                   # bf16 (TB, obs_p)

    # Hidden layer 1: Linear + ReLU (bf16 operands, f32 accumulation / activations).
    h1 = jnp.dot(x, w1_ref[...], preferred_element_type=jnp.float32) + b1_ref[...]
    h1 = jnp.maximum(h1, 0.0)

    # Hidden layer 2: Linear + ReLU.
    h2 = jnp.dot(h1.astype(jnp.bfloat16), w2_ref[...],
                 preferred_element_type=jnp.float32) + b2_ref[...]
    h2 = jnp.maximum(h2, 0.0)

    # Output layer: Linear + Tanh, then mask padded action columns to -inf.
    logits = jnp.dot(h2.astype(jnp.bfloat16), w3_ref[...],
                     preferred_element_type=jnp.float32) + b3_ref[...]
    logits = jnp.tanh(logits) + mask_ref[...]          # padded cols -> -inf, exp -> 0

    # Softmax over the action axis (f32).
    m = jnp.max(logits, axis=1, keepdims=True)
    e = jnp.exp(logits - m)
    denom = jnp.sum(e, axis=1, keepdims=True)
    inv = pl.reciprocal(denom, approx=True)            # EUP slot (~free)
    inv = inv * (2.0 - denom * inv)                    # one Newton step -> ~exact 1/x
    out_ref[...] = (e * inv).astype(out_ref.dtype)


def mlp_actor_forward(obs, params, *, batch_tile=512):
    """obs: (B, obs_dim) f32; params: dict of (in,out) weights / (1,out) biases.
    Returns softmax(tanh(MLP(obs))) of shape (B, act_dim).
    Note: v5e prefers batch_tile in 128..256 (1 vst slot); v6e/v7x like 256..512."""
    w1, b1 = params["w1"], params["b1"]
    w2, b2 = params["w2"], params["b2"]
    w3, b3 = params["w3"], params["b3"]

    B, obs_dim = obs.shape
    h1_dim, h2_dim, act_dim = w1.shape[1], w2.shape[1], w3.shape[1]

    # Pad feature dims to 128 lanes; batch tile TB is a multiple of 16 (bf16 packing).
    obs_p = _round_up(obs_dim, LANE)
    h1_p = _round_up(h1_dim, LANE)
    h2_p = _round_up(h2_dim, LANE)
    act_p = _round_up(act_dim, LANE)

    if B >= 2 * batch_tile:
        TB = batch_tile
    elif B > 16:
        # Keep >=2 grid steps so "parallel" can actually use both v7x TensorCores.
        TB = _round_up(-(-B // 2), 16)
    else:
        TB = _round_up(max(B, 1), 16)
    B_p = _round_up(B, TB)
    grid = (B_p // TB,)

    def pad2(a, rows, cols, dtype):
        a = jnp.asarray(a, jnp.float32)
        a = jnp.pad(a, ((0, rows - a.shape[0]), (0, cols - a.shape[1])))
        return a.astype(dtype)

    # bf16 operands for the MXU; biases / mask stay f32 for f32 elementwise math.
    obs_pd = pad2(obs, B_p, obs_p, jnp.bfloat16)
    w1_pd, b1_pd = pad2(w1, obs_p, h1_p, jnp.bfloat16), pad2(b1, 1, h1_p, jnp.float32)
    w2_pd, b2_pd = pad2(w2, h1_p, h2_p, jnp.bfloat16), pad2(b2, 1, h2_p, jnp.float32)
    w3_pd, b3_pd = pad2(w3, h2_p, act_p, jnp.bfloat16), pad2(b3, 1, act_p, jnp.float32)
    mask = jnp.where(jnp.arange(act_p) < act_dim, 0.0, -jnp.inf)
    mask = mask.astype(jnp.float32).reshape(1, act_p)

    # ---- VMEM budget (generation-aware). Count weights as double-buffered so the
    # estimate is a safe upper bound even if the Buffered(1) request is ignored. ----
    bf16, f32 = 2, 4
    w_bytes = 2 * bf16 * (obs_p * h1_p + h1_p * h2_p + h2_p * act_p)
    b_bytes = 2 * f32 * (h1_p + h2_p + 2 * act_p)
    io_bytes = 2 * (bf16 * TB * obs_p + f32 * TB * act_p)          # double-buffered tiles
    scratch = f32 * TB * (h1_p + h2_p + act_p) + bf16 * TB * (h1_p + h2_p)
    need = int(1.25 * (w_bytes + b_bytes + io_bytes + scratch))
    try:
        phys = int(pltpu.get_tpu_info().vmem_capacity_bytes)
    except Exception:
        phys = 64 << 20                                            # conservative (v7x)
    if phys <= (64 << 20):
        cap, scoped_default = 48 << 20, 32 << 20                   # v7x: 64 MiB physical
    else:
        cap, scoped_default = 100 << 20, 16 << 20                  # v5e/v6e: 128 MiB
    vmem_limit = min(need, cap) if need > scoped_default else None
    # TODO(synk): if hidden sizes grow so `need` exceeds `cap` even single-buffered,
    # add a K-tiled ("arbitrary") reduction grid axis instead of resident weights.

    out_shape = jax.ShapeDtypeStruct((B_p, act_p), jnp.float32)
    out_specs = pl.BlockSpec((TB, act_p), lambda i: (i, 0))        # lane-dense stores
    const = lambda i: (0, 0)
    cparams = pltpu.CompilerParams(
        dimension_semantics=("parallel",),
        vmem_limit_bytes=vmem_limit,
    )

    def build_call(single_buffer_weights):
        if single_buffer_weights:
            def wspec(shape):
                return pl.BlockSpec(shape, const, pipeline_mode=pl.Buffered(1))
        else:
            def wspec(shape):
                return pl.BlockSpec(shape, const)
        in_specs = [
            pl.BlockSpec((TB, obs_p), lambda i: (i, 0)),   # obs tile marches over batch
            wspec((obs_p, h1_p)), wspec((1, h1_p)),        # resident weights / biases
            wspec((h1_p, h2_p)), wspec((1, h2_p)),
            wspec((h2_p, act_p)), wspec((1, act_p)),
            wspec((1, act_p)),                             # additive softmax mask
        ]
        return pl.pallas_call(
            mlp_actor_kernel,
            out_shape=out_shape,
            grid=grid,
            in_specs=in_specs,
            out_specs=out_specs,
            compiler_params=cparams,
        )

    args = (obs_pd, w1_pd, b1_pd, w2_pd, b2_pd, w3_pd, b3_pd, mask)
    try:
        out_pd = build_call(True)(*args)
    except Exception:
        # Fallback: this JAX/interpret path rejects pipeline_mode on pallas_call
        # BlockSpecs; default double-buffered weights are correct, just use more VMEM.
        out_pd = build_call(False)(*args)

    return out_pd[:B, :act_dim]


def init_params(key, obs_dim, hidden_sizes, act_dim):
    """Deterministic synthetic init (Linear layers: (in,out) weights, (1,out) bias)."""
    sizes = [obs_dim] + list(hidden_sizes) + [act_dim]
    params = {}
    for j in range(len(sizes) - 1):
        key, kw, kb = jax.random.split(key, 3)
        bound = 1.0 / jnp.sqrt(sizes[j])
        params[f"w{j + 1}"] = jax.random.uniform(
            kw, (sizes[j], sizes[j + 1]), jnp.float32, -bound, bound)
        params[f"b{j + 1}"] = jax.random.uniform(
            kb, (1, sizes[j + 1]), jnp.float32, -bound, bound)
    return params


def reference_forward(obs, params):
    h = jnp.maximum(obs @ params["w1"] + params["b1"], 0.0)
    h = jnp.maximum(h @ params["w2"] + params["b2"], 0.0)
    logits = jnp.tanh(h @ params["w3"] + params["b3"])
    return jax.nn.softmax(logits, axis=1)


if __name__ == "__main__":
    key = jax.random.PRNGKey(0)
    B, obs_dim, hidden_sizes, act_dim = 4, 16, (32, 32), 8
    # act_limit is unused in MLPActor.forward (no action scaling there).

    key, k_obs = jax.random.split(key)
    obs = jax.random.normal(k_obs, (B, obs_dim), jnp.float32)
    params = init_params(key, obs_dim, hidden_sizes, act_dim)

    out = mlp_actor_forward(obs, params)
    out = jax.block_until_ready(out)

    ref = reference_forward(obs, params)
    assert out.shape == (B, act_dim)
    # bf16 matmul operands (f32 accumulation) -> slightly looser elementwise tolerance.
    assert jnp.allclose(out, ref, atol=1e-2, rtol=1e-2)
    # Newton-refined reciprocal -> rows renormalize to ~f32 exactness.
    assert jnp.allclose(jnp.sum(out, axis=1), 1.0, atol=1e-3)

    print("KERNEL_OK")
</pallas_src>

<mosaic_0001>
module attributes {stable_mosaic.version = 11 : i64} {
  func.func @mlp_actor_kernel(%arg0: i32, %arg1: memref<16x128xbf16, #tpu.memory_space<vmem>>, %arg2: memref<128x128xbf16, #tpu.memory_space<vmem>>, %arg3: memref<1x128xf32, #tpu.memory_space<vmem>>, %arg4: memref<128x128xbf16, #tpu.memory_space<vmem>>, %arg5: memref<1x128xf32, #tpu.memory_space<vmem>>, %arg6: memref<128x128xbf16, #tpu.memory_space<vmem>>, %arg7: memref<1x128xf32, #tpu.memory_space<vmem>>, %arg8: memref<1x128xf32, #tpu.memory_space<vmem>>, %arg9: memref<16x128xf32, #tpu.memory_space<vmem>>) attributes {dimension_semantics = [#tpu.dimension_semantics<parallel>], iteration_bounds = array<i64: 1>, scalar_prefetch = 0 : i64, scratch_operands = 0 : i64, tpu.core_type = #tpu.core_type<tc>, window_params = [{transform_indices = @transform_0, window_bounds = array<i64: 16, 128>}, {pipeline_mode = #tpu.pipeline_mode<synchronous>, transform_indices = @transform_1, window_bounds = array<i64: 128, 128>}, {pipeline_mode = #tpu.pipeline_mode<synchronous>, transform_indices = @transform_2, window_bounds = array<i64: 1, 128>}, {pipeline_mode = #tpu.pipeline_mode<synchronous>, transform_indices = @transform_3, window_bounds = array<i64: 128, 128>}, {pipeline_mode = #tpu.pipeline_mode<synchronous>, transform_indices = @transform_4, window_bounds = array<i64: 1, 128>}, {pipeline_mode = #tpu.pipeline_mode<synchronous>, transform_indices = @transform_5, window_bounds = array<i64: 128, 128>}, {pipeline_mode = #tpu.pipeline_mode<synchronous>, transform_indices = @transform_6, window_bounds = array<i64: 1, 128>}, {pipeline_mode = #tpu.pipeline_mode<synchronous>, transform_indices = @transform_7, window_bounds = array<i64: 1, 128>}, {transform_indices = @transform_8, window_bounds = array<i64: 16, 128>}]} {
    %c0 = arith.constant 0 : index
    %c0_0 = arith.constant 0 : index
    %0 = vector.load %arg1[%c0, %c0_0] : memref<16x128xbf16, #tpu.memory_space<vmem>>, vector<16x128xbf16>
    %c0_1 = arith.constant 0 : index
    %c0_2 = arith.constant 0 : index
    %1 = vector.load %arg2[%c0_1, %c0_2] : memref<128x128xbf16, #tpu.memory_space<vmem>>, vector<128x128xbf16>
    %cst = arith.constant dense<0.000000e+00> : vector<16x128xf32>
    %2 = tpu.matmul %0, %1, %cst {dimension_numbers = #tpu.dot_dimension_numbers<[1], [0], [0], [1], [0, 0, 1, 1], [], []>} : vector<16x128xbf16>, vector<128x128xbf16>, vector<16x128xf32> -> vector<16x128xf32>
    %c0_3 = arith.constant 0 : index
    %c0_4 = arith.constant 0 : index
    %3 = vector.load %arg3[%c0_3, %c0_4] : memref<1x128xf32, #tpu.memory_space<vmem>>, vector<1x128xf32>
    %4 = vector.broadcast %3 : vector<1x128xf32> to vector<16x128xf32>
    %5 = arith.addf %2, %4 : vector<16x128xf32>
    %cst_5 = arith.constant 0.000000e+00 : f32
    %6 = vector.broadcast %cst_5 : f32 to vector<16x128xf32>
    %7 = arith.maximumf %5, %6 : vector<16x128xf32>
    %8 = arith.truncf %7 : vector<16x128xf32> to vector<16x128xbf16>
    %c0_6 = arith.constant 0 : index
    %c0_7 = arith.constant 0 : index
    %9 = vector.load %arg4[%c0_6, %c0_7] : memref<128x128xbf16, #tpu.memory_space<vmem>>, vector<128x128xbf16>
    %cst_8 = arith.constant dense<0.000000e+00> : vector<16x128xf32>
    %10 = tpu.matmul %8, %9, %cst_8 {dimension_numbers = #tpu.dot_dimension_numbers<[1], [0], [0], [1], [0, 0, 1, 1], [], []>} : vector<16x128xbf16>, vector<128x128xbf16>, vector<16x128xf32> -> vector<16x128xf32>
    %c0_9 = arith.constant 0 : index
    %c0_10 = arith.constant 0 : index
    %11 = vector.load %arg5[%c0_9, %c0_10] : memref<1x128xf32, #tpu.memory_space<vmem>>, vector<1x128xf32>
    %12 = vector.broadcast %11 : vector<1x128xf32> to vector<16x128xf32>
    %13 = arith.addf %10, %12 : vector<16x128xf32>
    %cst_11 = arith.constant 0.000000e+00 : f32
    %14 = vector.broadcast %cst_11 : f32 to vector<16x128xf32>
    %15 = arith.maximumf %13, %14 : vector<16x128xf32>
    %16 = arith.truncf %15 : vector<16x128xf32> to vector<16x128xbf16>
    %c0_12 = arith.constant 0 : index
    %c0_13 = arith.constant 0 : index
    %17 = vector.load %arg6[%c0_12, %c0_13] : memref<128x128xbf16, #tpu.memory_space<vmem>>, vector<128x128xbf16>
    %cst_14 = arith.constant dense<0.000000e+00> : vector<16x128xf32>
    %18 = tpu.matmul %16, %17, %cst_14 {dimension_numbers = #tpu.dot_dimension_numbers<[1], [0], [0], [1], [0, 0, 1, 1], [], []>} : vector<16x128xbf16>, vector<128x128xbf16>, vector<16x128xf32> -> vector<16x128xf32>
    %c0_15 = arith.constant 0 : index
    %c0_16 = arith.constant 0 : index
    %19 = vector.load %arg7[%c0_15, %c0_16] : memref<1x128xf32, #tpu.memory_space<vmem>>, vector<1x128xf32>
    %20 = vector.broadcast %19 : vector<1x128xf32> to vector<16x128xf32>
    %21 = arith.addf %18, %20 : vector<16x128xf32>
    %22 = math.tanh %21 : vector<16x128xf32>
    %c0_17 = arith.constant 0 : index
    %c0_18 = arith.constant 0 : index
    %23 = vector.load %arg8[%c0_17, %c0_18] : memref<1x128xf32, #tpu.memory_space<vmem>>, vector<1x128xf32>
    %24 = vector.broadcast %23 : vector<1x128xf32> to vector<16x128xf32>
    %25 = arith.addf %22, %24 : vector<16x128xf32>
    %cst_19 = arith.constant dense<0xFF800000> : vector<16xf32>
    %26 = vector.multi_reduction <maximumf>, %25, %cst_19 [1] : vector<16x128xf32> to vector<16xf32>
    %27 = vector.shape_cast %26 : vector<16xf32> to vector<16x1xf32>
    %28 = vector.broadcast %27 : vector<16x1xf32> to vector<16x128xf32>
    %29 = arith.subf %25, %28 : vector<16x128xf32>
    %30 = math.exp %29 : vector<16x128xf32>
    %cst_20 = arith.constant dense<0.000000e+00> : vector<16xf32>
    %31 = vector.multi_reduction <add>, %30, %cst_20 [1] : vector<16x128xf32> to vector<16xf32>
    %32 = vector.shape_cast %31 : vector<16xf32> to vector<16x1xf32>
    %33 = tpu.reciprocal %32 {approx = true} : vector<16x1xf32> -> vector<16x1xf32>
    %34 = arith.mulf %32, %33 : vector<16x1xf32>
    %cst_21 = arith.constant 2.000000e+00 : f32
    %35 = vector.broadcast %cst_21 : f32 to vector<16x1xf32>
    %36 = arith.subf %35, %34 : vector<16x1xf32>
    %37 = arith.mulf %33, %36 : vector<16x1xf32>
    %38 = vector.broadcast %37 : vector<16x1xf32> to vector<16x128xf32>
    %39 = arith.mulf %30, %38 : vector<16x128xf32>
    %c0_22 = arith.constant 0 : index
    %c0_23 = arith.constant 0 : index
    %40 = vector.load %arg9[%c0_22, %c0_23] : memref<16x128xf32, #tpu.memory_space<vmem>>, vector<16x128xf32>
    tpu.vector_store %arg9[%c0_22, %c0_23], %39 {strides = array<i32>} : memref<16x128xf32, #tpu.memory_space<vmem>>, vector<16x128xf32>,
    return
  }
  func.func @transform_0(%arg0: i32) -> (i32, i32) {
    %c0_i32 = arith.constant 0 : i32
    %c0_i32_0 = arith.constant 0 : i32
    return %arg0, %c0_i32 : i32, i32
  }
  func.func @transform_1(%arg0: i32) -> (i32, i32) {
    %c0_i32 = arith.constant 0 : i32
    %c0_i32_0 = arith.constant 0 : i32
    %c0_i32_1 = arith.constant 0 : i32
    return %c0_i32, %c0_i32_0 : i32, i32
  }
  func.func @transform_2(%arg0: i32) -> (i32, i32) {
    %c0_i32 = arith.constant 0 : i32
    %c0_i32_0 = arith.constant 0 : i32
    %c0_i32_1 = arith.constant 0 : i32
    return %c0_i32, %c0_i32_0 : i32, i32
  }
  func.func @transform_3(%arg0: i32) -> (i32, i32) {
    %c0_i32 = arith.constant 0 : i32
    %c0_i32_0 = arith.constant 0 : i32
    %c0_i32_1 = arith.constant 0 : i32
    return %c0_i32, %c0_i32_0 : i32, i32
  }
  func.func @transform_4(%arg0: i32) -> (i32, i32) {
    %c0_i32 = arith.constant 0 : i32
    %c0_i32_0 = arith.constant 0 : i32
    %c0_i32_1 = arith.constant 0 : i32
    return %c0_i32, %c0_i32_0 : i32, i32
  }
  func.func @transform_5(%arg0: i32) -> (i32, i32) {
    %c0_i32 = arith.constant 0 : i32
    %c0_i32_0 = arith.constant 0 : i32
    %c0_i32_1 = arith.constant 0 : i32
    return %c0_i32, %c0_i32_0 : i32, i32
  }
  func.func @transform_6(%arg0: i32) -> (i32, i32) {
    %c0_i32 = arith.constant 0 : i32
    %c0_i32_0 = arith.constant 0 : i32
    %c0_i32_1 = arith.constant 0 : i32
    return %c0_i32, %c0_i32_0 : i32, i32
  }
  func.func @transform_7(%arg0: i32) -> (i32, i32) {
    %c0_i32 = arith.constant 0 : i32
    %c0_i32_0 = arith.constant 0 : i32
    %c0_i32_1 = arith.constant 0 : i32
    return %c0_i32, %c0_i32_0 : i32, i32
  }
  func.func @transform_8(%arg0: i32) -> (i32, i32) {
    %c0_i32 = arith.constant 0 : i32
    %c0_i32_0 = arith.constant 0 : i32
    return %arg0, %c0_i32 : i32, i32
  }
}

module attributes {stable_mosaic.version = 11 : i64} {
  func.func @mlp_actor_kernel(%arg0: i32, %arg1: memref<16x128xbf16, #tpu.memory_space<vmem>>, %arg2: memref<128x128xbf16, #tpu.memory_space<vmem>>, %arg3: memref<1x128xf32, #tpu.memory_space<vmem>>, %arg4: memref<128x128xbf16, #tpu.memory_space<vmem>>, %arg5: memref<1x128xf32, #tpu.memory_space<vmem>>, %arg6: memref<128x128xbf16, #tpu.memory_space<vmem>>, %arg7: memref<1x128xf32, #tpu.memory_space<vmem>>, %arg8: memref<1x128xf32, #tpu.memory_space<vmem>>, %arg9: memref<16x128xf32, #tpu.memory_space<vmem>>) attributes {dimension_semantics = [#tpu.dimension_semantics<parallel>], iteration_bounds = array<i64: 1>, scalar_prefetch = 0 : i64, scratch_operands = 0 : i64, tpu.core_type = #tpu.core_type<tc>, window_params = [{transform_indices = @transform_0, window_bounds = array<i64: 16, 128>}, {pipeline_mode = #tpu.pipeline_mode<synchronous>, transform_indices = @transform_1, window_bounds = array<i64: 128, 128>}, {pipeline_mode = #tpu.pipeline_mode<synchronous>, transform_indices = @transform_2, window_bounds = array<i64: 1, 128>}, {pipeline_mode = #tpu.pipeline_mode<synchronous>, transform_indices = @transform_3, window_bounds = array<i64: 128, 128>}, {pipeline_mode = #tpu.pipeline_mode<synchronous>, transform_indices = @transform_4, window_bounds = array<i64: 1, 128>}, {pipeline_mode = #tpu.pipeline_mode<synchronous>, transform_indices = @transform_5, window_bounds = array<i64: 128, 128>}, {pipeline_mode = #tpu.pipeline_mode<synchronous>, transform_indices = @transform_6, window_bounds = array<i64: 1, 128>}, {pipeline_mode = #tpu.pipeline_mode<synchronous>, transform_indices = @transform_7, window_bounds = array<i64: 1, 128>}, {transform_indices = @transform_8, window_bounds = array<i64: 16, 128>}]} {
    %c0 = arith.constant 0 : index
    %c0_0 = arith.constant 0 : index
    %0 = vector.load %arg1[%c0, %c0_0] : memref<16x128xbf16, #tpu.memory_space<vmem>>, vector<16x128xbf16>
    %c0_1 = arith.constant 0 : index
    %c0_2 = arith.constant 0 : index
    %1 = vector.load %arg2[%c0_1, %c0_2] : memref<128x128xbf16, #tpu.memory_space<vmem>>, vector<128x128xbf16>
    %cst = arith.constant dense<0.000000e+00> : vector<16x128xf32>
    %2 = tpu.matmul %0, %1, %cst {dimension_numbers = #tpu.dot_dimension_numbers<[1], [0], [0], [1], [0, 0, 1, 1], [], []>} : vector<16x128xbf16>, vector<128x128xbf16>, vector<16x128xf32> -> vector<16x128xf32>
    %c0_3 = arith.constant 0 : index
    %c0_4 = arith.constant 0 : index
    %3 = vector.load %arg3[%c0_3, %c0_4] : memref<1x128xf32, #tpu.memory_space<vmem>>, vector<1x128xf32>
    %4 = vector.broadcast %3 : vector<1x128xf32> to vector<16x128xf32>
    %5 = arith.addf %2, %4 : vector<16x128xf32>
    %cst_5 = arith.constant 0.000000e+00 : f32
    %6 = vector.broadcast %cst_5 : f32 to vector<16x128xf32>
    %7 = arith.maximumf %5, %6 : vector<16x128xf32>
    %8 = arith.truncf %7 : vector<16x128xf32> to vector<16x128xbf16>
    %c0_6 = arith.constant 0 : index
    %c0_7 = arith.constant 0 : index
    %9 = vector.load %arg4[%c0_6, %c0_7] : memref<128x128xbf16, #tpu.memory_space<vmem>>, vector<128x128xbf16>
    %cst_8 = arith.constant dense<0.000000e+00> : vector<16x128xf32>
    %10 = tpu.matmul %8, %9, %cst_8 {dimension_numbers = #tpu.dot_dimension_numbers<[1], [0], [0], [1], [0, 0, 1, 1], [], []>} : vector<16x128xbf16>, vector<128x128xbf16>, vector<16x128xf32> -> vector<16x128xf32>
    %c0_9 = arith.constant 0 : index
    %c0_10 = arith.constant 0 : index
    %11 = vector.load %arg5[%c0_9, %c0_10] : memref<1x128xf32, #tpu.memory_space<vmem>>, vector<1x128xf32>
    %12 = vector.broadcast %11 : vector<1x128xf32> to vector<16x128xf32>
    %13 = arith.addf %10, %12 : vector<16x128xf32>
    %cst_11 = arith.constant 0.000000e+00 : f32
    %14 = vector.broadcast %cst_11 : f32 to vector<16x128xf32>
    %15 = arith.maximumf %13, %14 : vector<16x128xf32>
    %16 = arith.truncf %15 : vector<16x128xf32> to vector<16x128xbf16>
    %c0_12 = arith.constant 0 : index
    %c0_13 = arith.constant 0 : index
    %17 = vector.load %arg6[%c0_12, %c0_13] : memref<128x128xbf16, #tpu.memory_space<vmem>>, vector<128x128xbf16>
    %cst_14 = arith.constant dense<0.000000e+00> : vector<16x128xf32>
    %18 = tpu.matmul %16, %17, %cst_14 {dimension_numbers = #tpu.dot_dimension_numbers<[1], [0], [0], [1], [0, 0, 1, 1], [], []>} : vector<16x128xbf16>, vector<128x128xbf16>, vector<16x128xf32> -> vector<16x128xf32>
    %c0_15 = arith.constant 0 : index
    %c0_16 = arith.constant 0 : index
    %19 = vector.load %arg7[%c0_15, %c0_16] : memref<1x128xf32, #tpu.memory_space<vmem>>, vector<1x128xf32>
    %20 = vector.broadcast %19 : vector<1x128xf32> to vector<16x128xf32>
    %21 = arith.addf %18, %20 : vector<16x128xf32>
    %22 = math.tanh %21 : vector<16x128xf32>
    %c0_17 = arith.constant 0 : index
    %c0_18 = arith.constant 0 : index
    %23 = vector.load %arg8[%c0_17, %c0_18] : memref<1x128xf32, #tpu.memory_space<vmem>>, vector<1x128xf32>
    %24 = vector.broadcast %23 : vector<1x128xf32> to vector<16x128xf32>
    %25 = arith.addf %22, %24 : vector<16x128xf32>
    %cst_19 = arith.constant dense<0xFF800000> : vector<16xf32>
    %26 = vector.multi_reduction <maximumf>, %25, %cst_19 [1] : vector<16x128xf32> to vector<16xf32>
    %27 = vector.shape_cast %26 : vector<16xf32> to vector<16x1xf32>
    %28 = vector.broadcast %27 : vector<16x1xf32> to vector<16x128xf32>
    %29 = arith.subf %25, %28 : vector<16x128xf32>
    %30 = math.exp %29 : vector<16x128xf32>
    %cst_20 = arith.constant dense<0.000000e+00> : vector<16xf32>
    %31 = vector.multi_reduction <add>, %30, %cst_20 [1] : vector<16x128xf32> to vector<16xf32>
    %32 = vector.shape_cast %31 : vector<16xf32> to vector<16x1xf32>
    %33 = tpu.reciprocal %32 {approx = true} : vector<16x1xf32> -> vector<16x1xf32>
    %34 = arith.mulf %32, %33 : vector<16x1xf32>
    %cst_21 = arith.constant 2.000000e+00 : f32
    %35 = vector.broadcast %cst_21 : f32 to vector<16x1xf32>
    %36 = arith.subf %35, %34 : vector<16x1xf32>
    %37 = arith.mulf %33, %36 : vector<16x1xf32>
    %38 = vector.broadcast %37 : vector<16x1xf32> to vector<16x128xf32>
    %39 = arith.mulf %30, %38 : vector<16x128xf32>
    %c0_22 = arith.constant 0 : index
    %c0_23 = arith.constant 0 : index
    %40 = vector.load %arg9[%c0_22, %c0_23] : memref<16x128xf32, #tpu.memory_space<vmem>>, vector<16x128xf32>
    tpu.vector_store %arg9[%c0_22, %c0_23], %39 {strides = array<i32>} : memref<16x128xf32, #tpu.memory_space<vmem>>, vector<16x128xf32>,
    return
  }
  func.func @transform_0(%arg0: i32) -> (i32, i32) {
    %c0_i32 = arith.constant 0 : i32
    %c0_i32_0 = arith.constant 0 : i32
    return %arg0, %c0_i32 : i32, i32
  }
  func.func @transform_1(%arg0: i32) -> (i32, i32) {
    %c0_i32 = arith.constant 0 : i32
    %c0_i32_0 = arith.constant 0 : i32
    %c0_i32_1 = arith.constant 0 : i32
    return %c0_i32, %c0_i32_0 : i32, i32
  }
  func.func @transform_2(%arg0: i32) -> (i32, i32) {
    %c0_i32 = arith.constant 0 : i32
    %c0_i32_0 = arith.constant 0 : i32
    %c0_i32_1 = arith.constant 0 : i32
    return %c0_i32, %c0_i32_0 : i32, i32
  }
  func.func @transform_3(%arg0: i32) -> (i32, i32) {
    %c0_i32 = arith.constant 0 : i32
    %c0_i32_0 = arith.constant 0 : i32
    %c0_i32_1 = arith.constant 0 : i32
    return %c0_i32, %c0_i32_0 : i32, i32
  }
  func.func @transform_4(%arg0: i32) -> (i32, i32) {
    %c0_i32 = arith.constant 0 : i32
    %c0_i32_0 = arith.constant 0 : i32
    %c0_i32_1 = arith.constant 0 : i32
    return %c0_i32, %c0_i32_0 : i32, i32
  }
  func.func @transform_5(%arg0: i32) -> (i32, i32) {
    %c0_i32 = arith.constant 0 : i32
    %c0_i32_0 = arith.constant 0 : i32
    %c0_i32_1 = arith.constant 0 : i32
    return %c0_i32, %c0_i32_0 : i32, i32
  }
  func.func @transform_6(%arg0: i32) -> (i32, i32) {
    %c0_i32 = arith.constant 0 : i32
    %c0_i32_0 = arith.constant 0 : i32
    %c0_i32_1 = arith.constant 0 : i32
    return %c0_i32, %c0_i32_0 : i32, i32
  }
  func.func @transform_7(%arg0: i32) -> (i32, i32) {
    %c0_i32 = arith.constant 0 : i32
    %c0_i32_0 = arith.constant 0 : i32
    %c0_i32_1 = arith.constant 0 : i32
    return %c0_i32, %c0_i32_0 : i32, i32
  }
  func.func @transform_8(%arg0: i32) -> (i32, i32) {
    %c0_i32 = arith.constant 0 : i32
    %c0_i32_0 = arith.constant 0 : i32
    return %arg0, %c0_i32 : i32, i32
  }
}

</mosaic_0001>

<bundles_post_ra>
// kernel: tpu_custom_call.1
= control target key start
LH: loop header
LB: loop body
LE: loop exit
PB: predicated region body
PF: predicated region fallthrough
CT: control target
= control target key end

     0   :  { %13 = vsyncpa [#allocation3], 0  ;;  %s958_s0 = inlined_call_operand.hbm [shape: bf16[16,128], index: 0, kind: input, shape index: {}]   ;;  %s959_s1 = inlined_call_operand.hbm [shape: bf16[128,128], index: 1, kind: input, shape index: {}]   ;;  %s960_s2 = inlined_call_operand.vmem [shape: f32[1,128], index: 2, kind: input, shape index: {}]   ;;  %s961_s3 = inlined_call_operand.hbm [shape: bf16[128,128], index: 3, kind: input, shape index: {}]   ;;  %s962_s4 = inlined_call_operand.vmem [shape: f32[1,128], index: 4, kind: input, shape index: {}]   ;;  %s963_s5 = inlined_call_operand.hbm [shape: bf16[128,128], index: 5, kind: input, shape index: {}]   ;;  %s964_s6 = inlined_call_operand.vmem [shape: f32[1,128], index: 6, kind: input, shape index: {}]   ;;  %s965_s7 = inlined_call_operand.vmem [shape: f32[1,128], index: 7, kind: input, shape index: {}]   ;;  %s966_s8 = inlined_call_operand.hbm [shape: f32[16,128], index: 8, kind: output, shape index: {}]  }
   0x1   :  { %14 = vsyncpa [#allocation6], 0 }
   0x2   :  { %15 = vsyncpa [#allocation9], 0 }
   0x3   :  { %16 = vsyncpa [#allocation4], 0  ;;  %s774_s27 = smov [#allocation5]   ;;  %s775_s29 = smov [#allocation2]  }
   0x4   :  { %s34_s28 = sshll.u32 %s774_s27, 4  ;;  %s22_s30 = sshll.u32 %s775_s29, 4  ;;  %s35_s28 = int_to_ptr.vmem [resolvable:$true] %s34_s28  ;;  %s830_s30 = int_to_ptr.vmem [resolvable:$true] %s22_s30 }
   0x5   :  { %s656_s11 = scalar_lea.hbm %s959_s1, 1024 }
   0x6   :  { %p657_p0 = scmp.ne.s32.totalorder %s959_s1, %s656_s11  ;;  %p660_p1 = scmp.lt.u32.totalorder %s656_s11, %s959_s1 }
   0x8   :  { %p662_p2 = pnand %p660_p1, %p657_p0 }
   0xa   :  { %665 = shalt.err (!%p662_p2)
}
   0xb   :  { %s666_s16 = scalar_lea.vmem %s35_s28, 1024  ;;  %p671_p4 = scmp.lt.s32.totalorder %s35_s28, %s35_s28 }
   0xc   :  { %p667_p3 = scmp.ne.s32.totalorder %s35_s28, %s666_s16  ;;  %p672_p5 = scmp.lt.s32.totalorder %s666_s16, %s666_s16 }
   0xe   :  { %p673_p6 = por %p672_p5, %p671_p4 }
  0x10   :  { %p674_p7 = pnand %p673_p6, %p667_p3 }
  0x12   :  { %677 = shalt.err (!%p674_p7)
}
  0x13   :  { %s776_s17 = smov 64   ;;  %s777_s18 = smov 4  }
  0x14   :  { %40 = dma.hbm_to_vmem [thread:$0]  %s959_s1, 1024, %s35_s28, [#allocation6], %s776_s17, %s776_s17, %s777_s18  }
  0x15   :  { %s678_s23 = scalar_lea.hbm %s958_s0, 128 }
  0x16   :  { %p679_p8 = scmp.ne.s32.totalorder %s958_s0, %s678_s23  ;;  %p682_p9 = scmp.lt.u32.totalorder %s678_s23, %s958_s0 }
  0x18   :  { %p684_p10 = pnand %p682_p9, %p679_p8 }
  0x1a   :  { %687 = shalt.err (!%p684_p10)
}
  0x1b   :  { %s688_s29 = scalar_lea.vmem %s830_s30, 128  ;;  %p693_p12 = scmp.lt.s32.totalorder %s830_s30, %s830_s30 }
  0x1c   :  { %p689_p11 = scmp.ne.s32.totalorder %s830_s30, %s688_s29  ;;  %p694_p13 = scmp.lt.s32.totalorder %s688_s29, %s688_s29 }
  0x1e   :  { %p695_p0 = por %p694_p13, %p693_p12 }
  0x20   :  { %p696_p1 = pnand %p695_p0, %p689_p11 }
  0x22   :  { %699 = shalt.err (!%p696_p1)
}
  0x23   :  { %28 = dma.hbm_to_vmem [thread:$0]  %s958_s0, 128, %s830_s30, [#allocation3], %s776_s17, %s776_s17, %s777_s18  }
  0x24   :  { %s778_s9 = smov [#allocation7]   ;;  %s779_s11 = smov [#allocation8]  }
  0x25   :  { %s48_s10 = sshll.u32 %s778_s9, 4  ;;  %s62_s12 = sshll.u32 %s779_s11, 4  ;;  %s49_s10 = int_to_ptr.vmem [resolvable:$true] %s48_s10  ;;  %s867_s12 = int_to_ptr.vmem [resolvable:$true] %s62_s12 }
  0x26   :  { %s700_s15 = scalar_lea.hbm %s961_s3, 1024 }
  0x27   :  { %p701_p2 = scmp.ne.s32.totalorder %s961_s3, %s700_s15  ;;  %p704_p3 = scmp.lt.u32.totalorder %s700_s15, %s961_s3 }
  0x29   :  { %p706_p4 = pnand %p704_p3, %p701_p2 }
  0x2b   :  { %709 = shalt.err (!%p706_p4)
}
  0x2c   :  { %s710_s0 = scalar_lea.vmem %s49_s10, 1024  ;;  %p715_p6 = scmp.lt.s32.totalorder %s49_s10, %s49_s10 }
  0x2d   :  { %p711_p5 = scmp.ne.s32.totalorder %s49_s10, %s710_s0  ;;  %p716_p7 = scmp.lt.s32.totalorder %s710_s0, %s710_s0 }
  0x2f   :  { %p717_p8 = por %p716_p7, %p715_p6 }
  0x31   :  { %p718_p9 = pnand %p717_p8, %p711_p5 }
  0x33   :  { %721 = shalt.err (!%p718_p9)
}
  0x34   :  { %54 = dma.hbm_to_vmem [thread:$0]  %s961_s3, 1024, %s49_s10, [#allocation6], %s776_s17, %s776_s17, %s777_s18  }
  0x35   :  { %s722_s25 = scalar_lea.hbm %s963_s5, 1024 }
  0x36   :  { %p723_p10 = scmp.ne.s32.totalorder %s963_s5, %s722_s25  ;;  %p726_p11 = scmp.lt.u32.totalorder %s722_s25, %s963_s5 }
  0x38   :  { %p728_p12 = pnand %p726_p11, %p723_p10 }
  0x3a   :  { %731 = shalt.err (!%p728_p12)
}
  0x3b   :  { %s732_s28 = scalar_lea.vmem %s867_s12, 1024  ;;  %p737_p0 = scmp.lt.s32.totalorder %s867_s12, %s867_s12 }
  0x3c   :  { %p733_p13 = scmp.ne.s32.totalorder %s867_s12, %s732_s28  ;;  %p738_p1 = scmp.lt.s32.totalorder %s732_s28, %s732_s28 }
  0x3e   :  { %p739_p2 = por %p738_p1, %p737_p0 }
  0x40   :  { %p740_p3 = pnand %p739_p2, %p733_p13 }
  0x42   :  { %743 = shalt.err (!%p740_p3)
}
  0x43   :  { %68 = dma.hbm_to_vmem [thread:$0]  %s963_s5, 1024, %s867_s12, [#allocation9], %s776_s17, %s776_s17, %s777_s18  }
  0x44   :  { %766 = dma.done.wait [#allocation3], 128  }
  0x45   :  { %767 = vsyncadd [#allocation3], 4294967168 }
  0x46   :  { %768 = dma.done.wait [#allocation6], 2048  }
  0x47   :  { %769 = vsyncadd [#allocation6], 4294965248 }
  0x48   :  { %770 = dma.done.wait [#allocation9], 1024  }
  0x49   :  { %771 = vsyncadd [#allocation9], 4294966272  ;;  %v780_v0 = vmov 0.0   ;;  %vm781_vm0 = vmmov 0   ;;  %v619_v1 = vld [vmem:[#allocation5] sm:$0xff]   ;;  %v620_v2 = vld [vmem:[#allocation5 + $0x8] sm:$0xff]  }
  0x4a   :  { %548 = vmatprep.subr.bf16.mxu0 %v780_v0  ;;  %564 = vmatprep.mubr.msk.bf16.mxu0 %vm781_vm0, %v780_v0  ;;  %v621_v3 = vld [vmem:[#allocation5 + $0x10] sm:$0xff]   ;;  %v628_v4 = vld [vmem:[#allocation7] sm:$0xff]   ;;  %v622_v5 = vld [vmem:[#allocation5 + $0x18] sm:$0xff]  }
  0x4b   :  { %568 = vmatprep.subr.bf16.mxu1 %v780_v0  ;;  %584 = vmatprep.mubr.msk.bf16.mxu1 %vm781_vm0, %v780_v0  ;;  %v629_v6 = vld [vmem:[#allocation7 + $0x8] sm:$0xff]   ;;  %v623_v7 = vld [vmem:[#allocation5 + $0x20] sm:$0xff]   ;;  %v630_v8 = vld [vmem:[#allocation7 + $0x10] sm:$0xff]  }
  0x4c   :  { %549 = vmatpush3.bf16.msra.mxu0 %v619_v1  ;;  %569 = vmatpush3.bf16.msra.mxu1 %v628_v4  ;;  %v624_v9 = vld [vmem:[#allocation5 + $0x28] sm:$0xff]   ;;  %v631_v10 = vld [vmem:[#allocation7 + $0x18] sm:$0xff]   ;;  %v625_v11 = vld [vmem:[#allocation5 + $0x30] sm:$0xff]  }
  0x4d   :  { %550 = vmatprep.subr.bf16.mxu0 %v780_v0  ;;  %570 = vmatprep.subr.bf16.mxu1 %v780_v0  ;;  %v632_v12 = vld [vmem:[#allocation7 + $0x20] sm:$0xff]   ;;  %v626_v13 = vld [vmem:[#allocation5 + $0x38] sm:$0xff]   ;;  %v633_v14 = vld [vmem:[#allocation7 + $0x28] sm:$0xff]  }
  0x4e   :  { %v627_v15 = vld [vmem:[#allocation2] sm:$0xff]   ;;  %v634_v16 = vld [vmem:[#allocation7 + $0x30] sm:$0xff]   ;;  %v636_v18 = vld [vmem:[#allocation8] sm:$0xff]  }
  0x4f   :  { %v635_v17 = vld [vmem:[#allocation7 + $0x38] sm:$0xff]   ;;  %v637_v19 = vld [vmem:[#allocation8 + $0x8] sm:$0xff]   ;;  %v638_v20 = vld [vmem:[#allocation8 + $0x10] sm:$0xff]  }
  0x50   :  { %551 = vmatpush3.bf16.msra.mxu0 %v620_v2  ;;  %571 = vmatpush3.bf16.msra.mxu1 %v629_v6  ;;  %v639_v21 = vld [vmem:[#allocation8 + $0x18] sm:$0xff]   ;;  %v640_v22 = vld [vmem:[#allocation8 + $0x20] sm:$0xff]   ;;  %v641_v23 = vld [vmem:[#allocation8 + $0x28] sm:$0xff]  }
  0x51   :  { %552 = vmatprep.subr.bf16.mxu0 %v780_v0  ;;  %572 = vmatprep.subr.bf16.mxu1 %v780_v0  ;;  %v492_v24 = vld [vmem:[%s960_s2] ss:$0 sm:$0xff]  ;;  %v642_v34 = vld [vmem:[#allocation8 + $0x30] sm:$0xff]  }
  0x52   :  { %v643_v35 = vld [vmem:[#allocation8 + $0x38] sm:$0xff]  }
  0x53   :  { %v502_v36 = vld [vmem:[%s962_s4] ss:$0 sm:$0xff] }
  0x54   :  { %553 = vmatpush3.bf16.msra.mxu0 %v621_v3  ;;  %573 = vmatpush3.bf16.msra.mxu1 %v630_v8  ;;  %v511_v46 = vld [vmem:[%s964_s6] ss:$0 sm:$0xff]  ;;  %s782_s6 = smov [#allocation10]  }
  0x55   :  { %554 = vmatprep.subr.bf16.mxu0 %v780_v0  ;;  %574 = vmatprep.subr.bf16.mxu1 %v780_v0  ;;  %v520_v53 = vld [vmem:[%s965_s7] ss:$0 sm:$0xff]  ;;  %s478_s7 = sshll.u32 %s782_s6, 4  ;;  %s479_s7 = int_to_ptr.vmem [resolvable:$true] %s478_s7 }
  0x56   :  { %s744_s13 = scalar_lea.vmem %s479_s7, 256  ;;  %p749_p5 = scmp.lt.s32.totalorder %s479_s7, %s479_s7 }
  0x57   :  { %p745_p4 = scmp.ne.s32.totalorder %s479_s7, %s744_s13  ;;  %p750_p6 = scmp.lt.s32.totalorder %s744_s13, %s744_s13 }
  0x58   :  { %555 = vmatpush3.bf16.msra.mxu0 %v622_v5  ;;  %575 = vmatpush3.bf16.msra.mxu1 %v631_v10 }
  0x59   :  { %556 = vmatprep.subr.bf16.mxu0 %v780_v0  ;;  %576 = vmatprep.subr.bf16.mxu1 %v780_v0  ;;  %p751_p7 = por %p750_p6, %p749_p5 }
  0x5b   :  { %p752_p8 = pnand %p751_p7, %p745_p4 }
  0x5c   :  { %557 = vmatpush3.bf16.msra.mxu0 %v623_v7  ;;  %577 = vmatpush3.bf16.msra.mxu1 %v632_v12 }
  0x5d   :  { %558 = vmatprep.subr.bf16.mxu0 %v780_v0  ;;  %578 = vmatprep.subr.bf16.mxu1 %v780_v0 }
  0x60   :  { %559 = vmatpush3.bf16.msra.mxu0 %v624_v9  ;;  %579 = vmatpush3.bf16.msra.mxu1 %v633_v14 }
  0x61   :  { %560 = vmatprep.subr.bf16.mxu0 %v780_v0  ;;  %580 = vmatprep.subr.bf16.mxu1 %v780_v0 }
  0x64   :  { %561 = vmatpush3.bf16.msra.mxu0 %v625_v11  ;;  %581 = vmatpush3.bf16.msra.mxu1 %v634_v16 }
  0x65   :  { %562 = vmatprep.subr.bf16.mxu0 %v780_v0  ;;  %582 = vmatprep.subr.bf16.mxu1 %v780_v0 }
  0x68   :  { %563 = vmatpush3.bf16.msra.mxu0 %v626_v13  ;;  %583 = vmatpush3.bf16.msra.mxu1 %v635_v17 }
  0x69   :  { %588 = vmatprep.subr.bf16.mxu0 %v780_v0 }
  0x6b   :  { %565 = vmatmul.mubr.bf16.vlgmr.msra.gmra.mrb[0].mxu0 %v627_v15 }
  0x6c   :  { %604 = vmatprep.mubr.msk.bf16.mxu0 %vm781_vm0, %v780_v0  ;;  %589 = vmatpush3.bf16.msra.mxu0 %v636_v18 }
  0x6d   :  { %590 = vmatprep.subr.bf16.mxu0 %v780_v0 }
  0x70   :  { %591 = vmatpush3.bf16.msra.mxu0 %v637_v19 }
  0x71   :  { %592 = vmatprep.subr.bf16.mxu0 %v780_v0 }
  0x74   :  { %593 = vmatpush3.bf16.msra.mxu0 %v638_v20 }
  0x75   :  { %594 = vmatprep.subr.bf16.mxu0 %v780_v0 }
  0x78   :  { %595 = vmatpush3.bf16.msra.mxu0 %v639_v21 }
  0x79   :  { %596 = vmatprep.subr.bf16.mxu0 %v780_v0 }
  0x7c   :  { %597 = vmatpush3.bf16.msra.mxu0 %v640_v22 }
  0x7d   :  { %598 = vmatprep.subr.bf16.mxu0 %v780_v0 }
  0x80   :  { %599 = vmatpush3.bf16.msra.mxu0 %v641_v23 }
  0x81   :  { %600 = vmatprep.subr.bf16.mxu0 %v780_v0 }
  0x84   :  { %601 = vmatpush3.bf16.msra.mxu0 %v642_v34 }
  0x85   :  { %602 = vmatprep.subr.bf16.mxu0 %v780_v0 }
  0x88   :  { %603 = vmatpush3.bf16.msra.mxu0 %v643_v35 }
 0x13e   :  { %v199_v25 = vpop.f32.mrb[0].mxu0 }
 0x13f   :  { %v200_v26 = vadd.f32 %v492_v24, %v199_v25  ;;  %v566_v27 = vpop.f32.mrb[1].mxu0 }
 0x140   :  { %v202_v28 = vpop.f32.mrb[2].mxu0 }
 0x141   :  { %v203_v29 = vadd.f32 %v492_v24, %v202_v28  ;;  %v567_v30 = vpop.f32.mrb[3].mxu0  ;;  %v206_v31 = vmax.f32 %v200_v26, 0.0 }
 0x143   :  { %v207_v32 = vmax.f32 %v203_v29, 0.0 }
 0x145   :  { %v208_v33 = vpack.c.bf16 %v207_v32, %v206_v31 }
 0x147   :  { %585 = vmatmul.mubr.bf16.vlgmr.msra.gmra.mrb[0].mxu1 %v208_v33 }
 0x21a   :  { %v314_v37 = vpop.f32.mrb[0].mxu1 }
 0x21b   :  { %v315_v38 = vadd.f32 %v502_v36, %v314_v37  ;;  %v586_v39 = vpop.f32.mrb[1].mxu1 }
 0x21c   :  { %v317_v40 = vpop.f32.mrb[2].mxu1 }
 0x21d   :  { %v318_v41 = vadd.f32 %v502_v36, %v317_v40  ;;  %v587_v42 = vpop.f32.mrb[3].mxu1  ;;  %v321_v43 = vmax.f32 %v315_v38, 0.0 }
 0x21f   :  { %v322_v44 = vmax.f32 %v318_v41, 0.0 }
 0x221   :  { %v323_v45 = vpack.c.bf16 %v322_v44, %v321_v43 }
 0x223   :  { %605 = vmatmul.mubr.bf16.vlgmr.msra.gmra.mrb[4].mxu0 %v323_v45 }
 0x2f6   :  { %v429_v47 = vpop.f32.mrb[4].mxu0 }
 0x2f7   :  { %v430_v48 = vadd.f32 %v511_v46, %v429_v47  ;;  %v606_v49 = vpop.f32.mrb[5].mxu0 }
 0x2f8   :  { %v432_v50 = vpop.f32.mrb[6].mxu0 }
 0x2f9   :  { %644 = vtanh.f32 %v430_v48  ;;  %v433_v51 = vadd.f32 %v511_v46, %v432_v50  ;;  %v607_v52 = vpop.f32.mrb[7].mxu0 }
 0x2fb   :  { %646 = vtanh.f32 %v433_v51 }
 0x303   :  { %v645_v54 = vpop.eup %644 }
 0x304   :  { %v445_v55 = vadd.f32 %v645_v54, %v520_v53 }
 0x305   :  { %v647_v56 = vpop.eup %646 }
 0x306   :  { %447 = vmax.xlane.f32.xlu0 %v445_v55  ;;  %v446_v57 = vadd.f32 %v647_v56, %v520_v53 }
 0x30a   :  { %449 = vmax.xlane.f32.xlu0 %v446_v57 }
 0x393   :  { %v448_v58 = vpop.xlane.xlu0 %447 }
 0x394   :  { %v451_v59 = vsub.f32 %v445_v55, %v448_v58 }
 0x396   :  { %v453_v60 = vmul.f32 1.442695, %v451_v59 }
 0x397   :  { %v450_v61 = vpop.xlane.xlu0 %449 }
 0x398   :  { %648 = vpow2.f32 %v453_v60  ;;  %v452_v62 = vsub.f32 %v446_v57, %v450_v61 }
 0x39a   :  { %v455_v63 = vmul.f32 1.442695, %v452_v62 }
 0x39c   :  { %650 = vpow2.f32 %v455_v63 }
 0x3a2   :  { %v649_v0 = vpop.eup %648 }
 0x3a3   :  { %457 = vadd.xlane.f32.xlu1 %v649_v0 }
 0x3a6   :  { %v651_v1 = vpop.eup %650 }
 0x3a7   :  { %459 = vadd.xlane.f32.xlu1 %v651_v1 }
 0x430   :  { %v458_v2 = vpop.xlane.xlu1 %457 }
 0x431   :  { %652 = vrcp.f32 %v458_v2 }
 0x434   :  { %v460_v3 = vpop.xlane.xlu1 %459 }
 0x435   :  { %654 = vrcp.f32 %v460_v3 }
 0x43b   :  { %v653_v4 = vpop.eup %652 }
 0x43c   :  { %v463_v5 = vmul.f32 %v653_v4, %v458_v2 }
 0x43e   :  { %v465_v6 = vsub.f32 2.0, %v463_v5 }
 0x43f   :  { %v655_v7 = vpop.eup %654 }
 0x440   :  { %v467_v8 = vmul.f32 %v653_v4, %v465_v6  ;;  %v464_v9 = vmul.f32 %v655_v7, %v460_v3 }
 0x442   :  { %v469_v10 = vmul.f32 %v649_v0, %v467_v8  ;;  %v466_v11 = vsub.f32 2.0, %v464_v9 }
 0x444   :  { %471 = vst [vmem:[#allocation10] sm:$0xff] %v469_v10  ;;  %v468_v12 = vmul.f32 %v655_v7, %v466_v11 }
 0x446   :  { %v470_v13 = vmul.f32 %v651_v1, %v468_v12 }
 0x448   :  { %472 = vst [vmem:[#allocation10 + $0x8] sm:$0xff] %v470_v13 }
 0x449   :  { %755 = shalt.err (!%p752_p8)
}
 0x44a   :  { %s756_s16 = scalar_lea.hbm %s966_s8, 256 }
 0x44b   :  { %p757_p9 = scmp.ne.s32.totalorder %s966_s8, %s756_s16  ;;  %p760_p10 = scmp.lt.u32.totalorder %s756_s16, %s966_s8 }
 0x44d   :  { %p762_p11 = pnand %p760_p10, %p757_p9 }
 0x44f   :  { %765 = shalt.err (!%p762_p11)
}
 0x450   :  { %s783_s30 = smov 128   ;;  %s784_s22 = smov 8  }
 0x451   :  { %484 = dma.vmem_to_hbm [thread:$0]  %s479_s7, 256, %s966_s8, [#allocation4], %s783_s30, %s783_s30, %s784_s22  }
 0x452   :  { %772 = dma.done.wait [#allocation4], 256  }
 0x453   :  { %773 = vsyncadd [#allocation4], 4294967040 }
 0x454   :  { %488 = vsyncpa [#allocation3], 1 }
 0x455   :  { %489 = vsyncpa [#allocation6], 1 }
 0x456   :  { %490 = vsyncpa [#allocation9], 1 }
 0x457   :  { %491 = vsyncpa [#allocation4], 1 }

// kernel: tpu_custom_call.1
= control target key start
LH: loop header
LB: loop body
LE: loop exit
PB: predicated region body
PF: predicated region fallthrough
CT: control target
= control target key end

     0   :  { %13 = vsyncpa [#allocation3], 0  ;;  %s958_s0 = inlined_call_operand.hbm [shape: bf16[16,128], index: 0, kind: input, shape index: {}]   ;;  %s959_s1 = inlined_call_operand.hbm [shape: bf16[128,128], index: 1, kind: input, shape index: {}]   ;;  %s960_s2 = inlined_call_operand.vmem [shape: f32[1,128], index: 2, kind: input, shape index: {}]   ;;  %s961_s3 = inlined_call_operand.hbm [shape: bf16[128,128], index: 3, kind: input, shape index: {}]   ;;  %s962_s4 = inlined_call_operand.vmem [shape: f32[1,128], index: 4, kind: input, shape index: {}]   ;;  %s963_s5 = inlined_call_operand.hbm [shape: bf16[128,128], index: 5, kind: input, shape index: {}]   ;;  %s964_s6 = inlined_call_operand.vmem [shape: f32[1,128], index: 6, kind: input, shape index: {}]   ;;  %s965_s7 = inlined_call_operand.vmem [shape: f32[1,128], index: 7, kind: input, shape index: {}]   ;;  %s966_s8 = inlined_call_operand.hbm [shape: f32[16,128], index: 8, kind: output, shape index: {}]  }
   0x1   :  { %14 = vsyncpa [#allocation6], 0 }
   0x2   :  { %15 = vsyncpa [#allocation9], 0 }
   0x3   :  { %16 = vsyncpa [#allocation4], 0  ;;  %s774_s27 = smov [#allocation5]   ;;  %s775_s29 = smov [#allocation2]  }
   0x4   :  { %s34_s28 = sshll.u32 %s774_s27, 4  ;;  %s22_s30 = sshll.u32 %s775_s29, 4  ;;  %s35_s28 = int_to_ptr.vmem [resolvable:$true] %s34_s28  ;;  %s830_s30 = int_to_ptr.vmem [resolvable:$true] %s22_s30 }
   0x5   :  { %s656_s11 = scalar_lea.hbm %s959_s1, 1024 }
   0x6   :  { %p657_p0 = scmp.ne.s32.totalorder %s959_s1, %s656_s11  ;;  %p660_p1 = scmp.lt.u32.totalorder %s656_s11, %s959_s1 }
   0x8   :  { %p662_p2 = pnand %p660_p1, %p657_p0 }
   0xa   :  { %665 = shalt.err (!%p662_p2)
}
   0xb   :  { %s666_s16 = scalar_lea.vmem %s35_s28, 1024  ;;  %p671_p4 = scmp.lt.s32.totalorder %s35_s28, %s35_s28 }
   0xc   :  { %p667_p3 = scmp.ne.s32.totalorder %s35_s28, %s666_s16  ;;  %p672_p5 = scmp.lt.s32.totalorder %s666_s16, %s666_s16 }
   0xe   :  { %p673_p6 = por %p672_p5, %p671_p4 }
  0x10   :  { %p674_p7 = pnand %p673_p6, %p667_p3 }
  0x12   :  { %677 = shalt.err (!%p674_p7)
}
  0x13   :  { %s776_s17 = smov 64   ;;  %s777_s18 = smov 4  }
  0x14   :  { %40 = dma.hbm_to_vmem [thread:$0]  %s959_s1, 1024, %s35_s28, [#allocation6], %s776_s17, %s776_s17, %s777_s18  }
  0x15   :  { %s678_s23 = scalar_lea.hbm %s958_s0, 128 }
  0x16   :  { %p679_p8 = scmp.ne.s32.totalorder %s958_s0, %s678_s23  ;;  %p682_p9 = scmp.lt.u32.totalorder %s678_s23, %s958_s0 }
  0x18   :  { %p684_p10 = pnand %p682_p9, %p679_p8 }
  0x1a   :  { %687 = shalt.err (!%p684_p10)
}
  0x1b   :  { %s688_s29 = scalar_lea.vmem %s830_s30, 128  ;;  %p693_p12 = scmp.lt.s32.totalorder %s830_s30, %s830_s30 }
  0x1c   :  { %p689_p11 = scmp.ne.s32.totalorder %s830_s30, %s688_s29  ;;  %p694_p13 = scmp.lt.s32.totalorder %s688_s29, %s688_s29 }
  0x1e   :  { %p695_p0 = por %p694_p13, %p693_p12 }
  0x20   :  { %p696_p1 = pnand %p695_p0, %p689_p11 }
  0x22   :  { %699 = shalt.err (!%p696_p1)
}
  0x23   :  { %28 = dma.hbm_to_vmem [thread:$0]  %s958_s0, 128, %s830_s30, [#allocation3], %s776_s17, %s776_s17, %s777_s18  }
  0x24   :  { %s778_s9 = smov [#allocation7]   ;;  %s779_s11 = smov [#allocation8]  }
  0x25   :  { %s48_s10 = sshll.u32 %s778_s9, 4  ;;  %s62_s12 = sshll.u32 %s779_s11, 4  ;;  %s49_s10 = int_to_ptr.vmem [resolvable:$true] %s48_s10  ;;  %s867_s12 = int_to_ptr.vmem [resolvable:$true] %s62_s12 }
  0x26   :  { %s700_s15 = scalar_lea.hbm %s961_s3, 1024 }
  0x27   :  { %p701_p2 = scmp.ne.s32.totalorder %s961_s3, %s700_s15  ;;  %p704_p3 = scmp.lt.u32.totalorder %s700_s15, %s961_s3 }
  0x29   :  { %p706_p4 = pnand %p704_p3, %p701_p2 }
  0x2b   :  { %709 = shalt.err (!%p706_p4)
}
  0x2c   :  { %s710_s0 = scalar_lea.vmem %s49_s10, 1024  ;;  %p715_p6 = scmp.lt.s32.totalorder %s49_s10, %s49_s10 }
  0x2d   :  { %p711_p5 = scmp.ne.s32.totalorder %s49_s10, %s710_s0  ;;  %p716_p7 = scmp.lt.s32.totalorder %s710_s0, %s710_s0 }
  0x2f   :  { %p717_p8 = por %p716_p7, %p715_p6 }
  0x31   :  { %p718_p9 = pnand %p717_p8, %p711_p5 }
  0x33   :  { %721 = shalt.err (!%p718_p9)
}
  0x34   :  { %54 = dma.hbm_to_vmem [thread:$0]  %s961_s3, 1024, %s49_s10, [#allocation6], %s776_s17, %s776_s17, %s777_s18  }
  0x35   :  { %s722_s25 = scalar_lea.hbm %s963_s5, 1024 }
  0x36   :  { %p723_p10 = scmp.ne.s32.totalorder %s963_s5, %s722_s25  ;;  %p726_p11 = scmp.lt.u32.totalorder %s722_s25, %s963_s5 }
  0x38   :  { %p728_p12 = pnand %p726_p11, %p723_p10 }
  0x3a   :  { %731 = shalt.err (!%p728_p12)
}
  0x3b   :  { %s732_s28 = scalar_lea.vmem %s867_s12, 1024  ;;  %p737_p0 = scmp.lt.s32.totalorder %s867_s12, %s867_s12 }
  0x3c   :  { %p733_p13 = scmp.ne.s32.totalorder %s867_s12, %s732_s28  ;;  %p738_p1 = scmp.lt.s32.totalorder %s732_s28, %s732_s28 }
  0x3e   :  { %p739_p2 = por %p738_p1, %p737_p0 }
  0x40   :  { %p740_p3 = pnand %p739_p2, %p733_p13 }
  0x42   :  { %743 = shalt.err (!%p740_p3)
}
  0x43   :  { %68 = dma.hbm_to_vmem [thread:$0]  %s963_s5, 1024, %s867_s12, [#allocation9], %s776_s17, %s776_s17, %s777_s18  }
  0x44   :  { %766 = dma.done.wait [#allocation3], 128  }
  0x45   :  { %767 = vsyncadd [#allocation3], 4294967168 }
  0x46   :  { %768 = dma.done.wait [#allocation6], 2048  }
  0x47   :  { %769 = vsyncadd [#allocation6], 4294965248 }
  0x48   :  { %770 = dma.done.wait [#allocation9], 1024  }
  0x49   :  { %771 = vsyncadd [#allocation9], 4294966272  ;;  %v780_v0 = vmov 0.0   ;;  %vm781_vm0 = vmmov 0   ;;  %v619_v1 = vld [vmem:[#allocation5] sm:$0xff]   ;;  %v620_v2 = vld [vmem:[#allocation5 + $0x8] sm:$0xff]  }
  0x4a   :  { %548 = vmatprep.subr.bf16.mxu0 %v780_v0  ;;  %564 = vmatprep.mubr.msk.bf16.mxu0 %vm781_vm0, %v780_v0  ;;  %v621_v3 = vld [vmem:[#allocation5 + $0x10] sm:$0xff]   ;;  %v628_v4 = vld [vmem:[#allocation7] sm:$0xff]   ;;  %v622_v5 = vld [vmem:[#allocation5 + $0x18] sm:$0xff]  }
  0x4b   :  { %568 = vmatprep.subr.bf16.mxu1 %v780_v0  ;;  %584 = vmatprep.mubr.msk.bf16.mxu1 %vm781_vm0, %v780_v0  ;;  %v629_v6 = vld [vmem:[#allocation7 + $0x8] sm:$0xff]   ;;  %v623_v7 = vld [vmem:[#allocation5 + $0x20] sm:$0xff]   ;;  %v630_v8 = vld [vmem:[#allocation7 + $0x10] sm:$0xff]  }
  0x4c   :  { %549 = vmatpush3.bf16.msra.mxu0 %v619_v1  ;;  %569 = vmatpush3.bf16.msra.mxu1 %v628_v4  ;;  %v624_v9 = vld [vmem:[#allocation5 + $0x28] sm:$0xff]   ;;  %v631_v10 = vld [vmem:[#allocation7 + $0x18] sm:$0xff]   ;;  %v625_v11 = vld [vmem:[#allocation5 + $0x30] sm:$0xff]  }
  0x4d   :  { %550 = vmatprep.subr.bf16.mxu0 %v780_v0  ;;  %570 = vmatprep.subr.bf16.mxu1 %v780_v0  ;;  %v632_v12 = vld [vmem:[#allocation7 + $0x20] sm:$0xff]   ;;  %v626_v13 = vld [vmem:[#allocation5 + $0x38] sm:$0xff]   ;;  %v633_v14 = vld [vmem:[#allocation7 + $0x28] sm:$0xff]  }
  0x4e   :  { %v627_v15 = vld [vmem:[#allocation2] sm:$0xff]   ;;  %v634_v16 = vld [vmem:[#allocation7 + $0x30] sm:$0xff]   ;;  %v636_v18 = vld [vmem:[#allocation8] sm:$0xff]  }
  0x4f   :  { %v635_v17 = vld [vmem:[#allocation7 + $0x38] sm:$0xff]   ;;  %v637_v19 = vld [vmem:[#allocation8 + $0x8] sm:$0xff]   ;;  %v638_v20 = vld [vmem:[#allocation8 + $0x10] sm:$0xff]  }
  0x50   :  { %551 = vmatpush3.bf16.msra.mxu0 %v620_v2  ;;  %571 = vmatpush3.bf16.msra.mxu1 %v629_v6  ;;  %v639_v21 = vld [vmem:[#allocation8 + $0x18] sm:$0xff]   ;;  %v640_v22 = vld [vmem:[#allocation8 + $0x20] sm:$0xff]   ;;  %v641_v23 = vld [vmem:[#allocation8 + $0x28] sm:$0xff]  }
  0x51   :  { %552 = vmatprep.subr.bf16.mxu0 %v780_v0  ;;  %572 = vmatprep.subr.bf16.mxu1 %v780_v0  ;;  %v492_v24 = vld [vmem:[%s960_s2] ss:$0 sm:$0xff]  ;;  %v642_v34 = vld [vmem:[#allocation8 + $0x30] sm:$0xff]  }
  0x52   :  { %v643_v35 = vld [vmem:[#allocation8 + $0x38] sm:$0xff]  }
  0x53   :  { %v502_v36 = vld [vmem:[%s962_s4] ss:$0 sm:$0xff] }
  0x54   :  { %553 = vmatpush3.bf16.msra.mxu0 %v621_v3  ;;  %573 = vmatpush3.bf16.msra.mxu1 %v630_v8  ;;  %v511_v46 = vld [vmem:[%s964_s6] ss:$0 sm:$0xff]  ;;  %s782_s6 = smov [#allocation10]  }
  0x55   :  { %554 = vmatprep.subr.bf16.mxu0 %v780_v0  ;;  %574 = vmatprep.subr.bf16.mxu1 %v780_v0  ;;  %v520_v53 = vld [vmem:[%s965_s7] ss:$0 sm:$0xff]  ;;  %s478_s7 = sshll.u32 %s782_s6, 4  ;;  %s479_s7 = int_to_ptr.vmem [resolvable:$true] %s478_s7 }
  0x56   :  { %s744_s13 = scalar_lea.vmem %s479_s7, 256  ;;  %p749_p5 = scmp.lt.s32.totalorder %s479_s7, %s479_s7 }
  0x57   :  { %p745_p4 = scmp.ne.s32.totalorder %s479_s7, %s744_s13  ;;  %p750_p6 = scmp.lt.s32.totalorder %s744_s13, %s744_s13 }
  0x58   :  { %555 = vmatpush3.bf16.msra.mxu0 %v622_v5  ;;  %575 = vmatpush3.bf16.msra.mxu1 %v631_v10 }
  0x59   :  { %556 = vmatprep.subr.bf16.mxu0 %v780_v0  ;;  %576 = vmatprep.subr.bf16.mxu1 %v780_v0  ;;  %p751_p7 = por %p750_p6, %p749_p5 }
  0x5b   :  { %p752_p8 = pnand %p751_p7, %p745_p4 }
  0x5c   :  { %557 = vmatpush3.bf16.msra.mxu0 %v623_v7  ;;  %577 = vmatpush3.bf16.msra.mxu1 %v632_v12 }
  0x5d   :  { %558 = vmatprep.subr.bf16.mxu0 %v780_v0  ;;  %578 = vmatprep.subr.bf16.mxu1 %v780_v0 }
  0x60   :  { %559 = vmatpush3.bf16.msra.mxu0 %v624_v9  ;;  %579 = vmatpush3.bf16.msra.mxu1 %v633_v14 }
  0x61   :  { %560 = vmatprep.subr.bf16.mxu0 %v780_v0  ;;  %580 = vmatprep.subr.bf16.mxu1 %v780_v0 }
  0x64   :  { %561 = vmatpush3.bf16.msra.mxu0 %v625_v11  ;;  %581 = vmatpush3.bf16.msra.mxu1 %v634_v16 }
  0x65   :  { %562 = vmatprep.subr.bf16.mxu0 %v780_v0  ;;  %582 = vmatprep.subr.bf16.mxu1 %v780_v0 }
  0x68   :  { %563 = vmatpush3.bf16.msra.mxu0 %v626_v13  ;;  %583 = vmatpush3.bf16.msra.mxu1 %v635_v17 }
  0x69   :  { %588 = vmatprep.subr.bf16.mxu0 %v780_v0 }
  0x6b   :  { %565 = vmatmul.mubr.bf16.vlgmr.msra.gmra.mrb[0].mxu0 %v627_v15 }
  0x6c   :  { %604 = vmatprep.mubr.msk.bf16.mxu0 %vm781_vm0, %v780_v0  ;;  %589 = vmatpush3.bf16.msra.mxu0 %v636_v18 }
  0x6d   :  { %590 = vmatprep.subr.bf16.mxu0 %v780_v0 }
  0x70   :  { %591 = vmatpush3.bf16.msra.mxu0 %v637_v19 }
  0x71   :  { %592 = vmatprep.subr.bf16.mxu0 %v780_v0 }
  0x74   :  { %593 = vmatpush3.bf16.msra.mxu0 %v638_v20 }
  0x75   :  { %594 = vmatprep.subr.bf16.mxu0 %v780_v0 }
  0x78   :  { %595 = vmatpush3.bf16.msra.mxu0 %v639_v21 }
  0x79   :  { %596 = vmatprep.subr.bf16.mxu0 %v780_v0 }
  0x7c   :  { %597 = vmatpush3.bf16.msra.mxu0 %v640_v22 }
  0x7d   :  { %598 = vmatprep.subr.bf16.mxu0 %v780_v0 }
  0x80   :  { %599 = vmatpush3.bf16.msra.mxu0 %v641_v23 }
  0x81   :  { %600 = vmatprep.subr.bf16.mxu0 %v780_v0 }
  0x84   :  { %601 = vmatpush3.bf16.msra.mxu0 %v642_v34 }
  0x85   :  { %602 = vmatprep.subr.bf16.mxu0 %v780_v0 }
  0x88   :  { %603 = vmatpush3.bf16.msra.mxu0 %v643_v35 }
 0x13e   :  { %v199_v25 = vpop.f32.mrb[0].mxu0 }
 0x13f   :  { %v200_v26 = vadd.f32 %v492_v24, %v199_v25  ;;  %v566_v27 = vpop.f32.mrb[1].mxu0 }
 0x140   :  { %v202_v28 = vpop.f32.mrb[2].mxu0 }
 0x141   :  { %v203_v29 = vadd.f32 %v492_v24, %v202_v28  ;;  %v567_v30 = vpop.f32.mrb[3].mxu0  ;;  %v206_v31 = vmax.f32 %v200_v26, 0.0 }
 0x143   :  { %v207_v32 = vmax.f32 %v203_v29, 0.0 }
 0x145   :  { %v208_v33 = vpack.c.bf16 %v207_v32, %v206_v31 }
 0x147   :  { %585 = vmatmul.mubr.bf16.vlgmr.msra.gmra.mrb[0].mxu1 %v208_v33 }
 0x21a   :  { %v314_v37 = vpop.f32.mrb[0].mxu1 }
 0x21b   :  { %v315_v38 = vadd.f32 %v502_v36, %v314_v37  ;;  %v586_v39 = vpop.f32.mrb[1].mxu1 }
 0x21c   :  { %v317_v40 = vpop.f32.mrb[2].mxu1 }
 0x21d   :  { %v318_v41 = vadd.f32 %v502_v36, %v317_v40  ;;  %v587_v42 = vpop.f32.mrb[3].mxu1  ;;  %v321_v43 = vmax.f32 %v315_v38, 0.0 }
 0x21f   :  { %v322_v44 = vmax.f32 %v318_v41, 0.0 }
 0x221   :  { %v323_v45 = vpack.c.bf16 %v322_v44, %v321_v43 }
 0x223   :  { %605 = vmatmul.mubr.bf16.vlgmr.msra.gmra.mrb[4].mxu0 %v323_v45 }
 0x2f6   :  { %v429_v47 = vpop.f32.mrb[4].mxu0 }
 0x2f7   :  { %v430_v48 = vadd.f32 %v511_v46, %v429_v47  ;;  %v606_v49 = vpop.f32.mrb[5].mxu0 }
 0x2f8   :  { %v432_v50 = vpop.f32.mrb[6].mxu0 }
 0x2f9   :  { %644 = vtanh.f32 %v430_v48  ;;  %v433_v51 = vadd.f32 %v511_v46, %v432_v50  ;;  %v607_v52 = vpop.f32.mrb[7].mxu0 }
 0x2fb   :  { %646 = vtanh.f32 %v433_v51 }
 0x303   :  { %v645_v54 = vpop.eup %644 }
 0x304   :  { %v445_v55 = vadd.f32 %v645_v54, %v520_v53 }
 0x305   :  { %v647_v56 = vpop.eup %646 }
 0x306   :  { %447 = vmax.xlane.f32.xlu0 %v445_v55  ;;  %v446_v57 = vadd.f32 %v647_v56, %v520_v53 }
 0x30a   :  { %449 = vmax.xlane.f32.xlu0 %v446_v57 }
 0x393   :  { %v448_v58 = vpop.xlane.xlu0 %447 }
 0x394   :  { %v451_v59 = vsub.f32 %v445_v55, %v448_v58 }
 0x396   :  { %v453_v60 = vmul.f32 1.442695, %v451_v59 }
 0x397   :  { %v450_v61 = vpop.xlane.xlu0 %449 }
 0x398   :  { %648 = vpow2.f32 %v453_v60  ;;  %v452_v62 = vsub.f32 %v446_v57, %v450_v61 }
 0x39a   :  { %v455_v63 = vmul.f32 1.442695, %v452_v62 }
 0x39c   :  { %650 = vpow2.f32 %v455_v63 }
 0x3a2   :  { %v649_v0 = vpop.eup %648 }
 0x3a3   :  { %457 = vadd.xlane.f32.xlu1 %v649_v0 }
 0x3a6   :  { %v651_v1 = vpop.eup %650 }
 0x3a7   :  { %459 = vadd.xlane.f32.xlu1 %v651_v1 }
 0x430   :  { %v458_v2 = vpop.xlane.xlu1 %457 }
 0x431   :  { %652 = vrcp.f32 %v458_v2 }
 0x434   :  { %v460_v3 = vpop.xlane.xlu1 %459 }
 0x435   :  { %654 = vrcp.f32 %v460_v3 }
 0x43b   :  { %v653_v4 = vpop.eup %652 }
 0x43c   :  { %v463_v5 = vmul.f32 %v653_v4, %v458_v2 }
 0x43e   :  { %v465_v6 = vsub.f32 2.0, %v463_v5 }
 0x43f   :  { %v655_v7 = vpop.eup %654 }
 0x440   :  { %v467_v8 = vmul.f32 %v653_v4, %v465_v6  ;;  %v464_v9 = vmul.f32 %v655_v7, %v460_v3 }
 0x442   :  { %v469_v10 = vmul.f32 %v649_v0, %v467_v8  ;;  %v466_v11 = vsub.f32 2.0, %v464_v9 }
 0x444   :  { %471 = vst [vmem:[#allocation10] sm:$0xff] %v469_v10  ;;  %v468_v12 = vmul.f32 %v655_v7, %v466_v11 }
 0x446   :  { %v470_v13 = vmul.f32 %v651_v1, %v468_v12 }
 0x448   :  { %472 = vst [vmem:[#allocation10 + $0x8] sm:$0xff] %v470_v13 }
 0x449   :  { %755 = shalt.err (!%p752_p8)
}
 0x44a   :  { %s756_s16 = scalar_lea.hbm %s966_s8, 256 }
 0x44b   :  { %p757_p9 = scmp.ne.s32.totalorder %s966_s8, %s756_s16  ;;  %p760_p10 = scmp.lt.u32.totalorder %s756_s16, %s966_s8 }
 0x44d   :  { %p762_p11 = pnand %p760_p10, %p757_p9 }
 0x44f   :  { %765 = shalt.err (!%p762_p11)
}
 0x450   :  { %s783_s30 = smov 128   ;;  %s784_s22 = smov 8  }
 0x451   :  { %484 = dma.vmem_to_hbm [thread:$0]  %s479_s7, 256, %s966_s8, [#allocation4], %s783_s30, %s783_s30, %s784_s22  }
 0x452   :  { %772 = dma.done.wait [#allocation4], 256  }
 0x453   :  { %773 = vsyncadd [#allocation4], 4294967040 }
 0x454   :  { %488 = vsyncpa [#allocation3], 1 }
 0x455   :  { %489 = vsyncpa [#allocation6], 1 }
 0x456   :  { %490 = vsyncpa [#allocation9], 1 }
 0x457   :  { %491 = vsyncpa [#allocation4], 1 }

</bundles_post_ra>
